<compile_context>
chip_gen: v7x
topology: tpu7x:2x2x1
jax: 0.10.0
libtpu: 0.0.40
codegen_flags: <defaults>
</compile_context>

<pallas_src>
import jax
import jax.numpy as jnp
from jax.experimental import pallas as pl
from jax.experimental.pallas import tpu as pltpu

LANE = 128     # lane width: pad every feature dim to a multiple of this
SUBLANE = 8    # sublane granularity for the batch tile
MAX_TB = 256   # max batch tile (MXU M-dim granule on v6e/v7x; tiny VMEM cost)


def _round_up(x, m):
    return (x + m - 1) // m * m


def autoencoder_kernel(x_ref,
                       w1_ref, b1_ref,   # encoder layer 1: in  -> hid
                       w2_ref, b2_ref,   # encoder layer 2: hid -> out
                       w3_ref, b3_ref,   # decoder layer 1: out -> hid
                       w4_ref, b4_ref,   # decoder layer 2: hid -> in
                       fea_ref, lat_ref):
    """Fused 4x(matmul + bias + ReLU) on one (TB, 128*k) batch tile in VMEM.

    Matmul operands are bf16 (MXU), accumulation / bias / ReLU are f32 (VPU).
    """
    x = x_ref[...].astype(jnp.bfloat16)

    # ---- encoder ----
    h1 = jnp.dot(x, w1_ref[...], preferred_element_type=jnp.float32) + b1_ref[...]
    h1 = jnp.maximum(h1, 0.0).astype(jnp.bfloat16)

    lat = jnp.dot(h1, w2_ref[...], preferred_element_type=jnp.float32) + b2_ref[...]
    lat = jnp.maximum(lat, 0.0)
    lat_ref[...] = lat.astype(lat_ref.dtype)

    # ---- decoder ----
    h2 = jnp.dot(lat.astype(jnp.bfloat16), w3_ref[...],
                 preferred_element_type=jnp.float32) + b3_ref[...]
    h2 = jnp.maximum(h2, 0.0).astype(jnp.bfloat16)

    fea = jnp.dot(h2, w4_ref[...], preferred_element_type=jnp.float32) + b4_ref[...]
    fea_ref[...] = jnp.maximum(fea, 0.0).astype(fea_ref.dtype)


def autoencoder_forward(x, params):
    """x: [B, in_dim] float32.  params: dict from init_params (padded, bf16 weights).

    Returns (fea_new [B, in_dim], latent [B, out_dim]) in x.dtype.
    """
    in_dim, hid_dim, out_dim = params["dims"]
    B = x.shape[0]
    assert x.shape[1] == in_dim

    in_p = params["w1"].shape[0]
    hid_p = params["w1"].shape[1]
    out_p = params["w2"].shape[1]

    # Batch tile: multiple of 8 sublanes, capped at MAX_TB; pad B to a multiple.
    TB = min(MAX_TB, _round_up(B, SUBLANE))
    Bp = _round_up(B, TB)
    grid = (Bp // TB,)

    # Pad input to lane-dense / tile-aligned shape (zeros are harmless:
    # padded weight rows/cols and biases are zero, ReLU(0) = 0).
    xp = jnp.pad(x, ((0, Bp - B), (0, in_p - in_dim)))

    # Weights/biases: constant block index -> stay VMEM-resident across the grid.
    def pinned(shape):
        return pl.BlockSpec(shape, lambda i: (0,) * len(shape))

    fea_p, lat_p = pl.pallas_call(
        autoencoder_kernel,
        out_shape=(
            jax.ShapeDtypeStruct((Bp, in_p), x.dtype),   # fea_new (padded)
            jax.ShapeDtypeStruct((Bp, out_p), x.dtype),  # latent  (padded)
        ),
        grid=grid,
        in_specs=[
            pl.BlockSpec((TB, in_p), lambda i: (i, 0)),   # x batch tile
            pinned((in_p, hid_p)),  pinned((1, hid_p)),   # w1, b1
            pinned((hid_p, out_p)), pinned((1, out_p)),   # w2, b2
            pinned((out_p, hid_p)), pinned((1, hid_p)),   # w3, b3
            pinned((hid_p, in_p)),  pinned((1, in_p)),    # w4, b4
        ],
        out_specs=(
            pl.BlockSpec((TB, in_p), lambda i: (i, 0)),
            pl.BlockSpec((TB, out_p), lambda i: (i, 0)),
        ),
        compiler_params=pltpu.CompilerParams(
            dimension_semantics=("parallel",),
        ),
    )(
        xp,
        params["w1"], params["b1"],
        params["w2"], params["b2"],
        params["w3"], params["b3"],
        params["w4"], params["b4"],
    )

    # Strip batch / lane padding.
    return fea_p[:B, :in_dim], lat_p[:B, :out_dim]


def init_params(key, in_dim, hid_dim, out_dim):
    """PyTorch-nn.Linear-style init (U[-1/sqrt(fan_in), 1/sqrt(fan_in)]).

    Weights stored transposed [fan_in, fan_out], zero-padded to multiples of 128
    lanes and cast to bf16; biases stored as padded [1, fan_out] f32 rows.
    """
    in_p = _round_up(in_dim, LANE)
    hid_p = _round_up(hid_dim, LANE)
    out_p = _round_up(out_dim, LANE)

    def linear(k, fan_in, fan_out, fan_in_p, fan_out_p):
        kw, kb = jax.random.split(k)
        bound = 1.0 / jnp.sqrt(float(fan_in))
        w = jax.random.uniform(kw, (fan_in, fan_out), jnp.float32, -bound, bound)
        b = jax.random.uniform(kb, (fan_out,), jnp.float32, -bound, bound)
        w_p = jnp.zeros((fan_in_p, fan_out_p), jnp.bfloat16)
        w_p = w_p.at[:fan_in, :fan_out].set(w.astype(jnp.bfloat16))
        b_p = jnp.zeros((1, fan_out_p), jnp.float32)
        b_p = b_p.at[0, :fan_out].set(b)
        return w_p, b_p

    k1, k2, k3, k4 = jax.random.split(key, 4)
    w1, b1 = linear(k1, in_dim, hid_dim, in_p, hid_p)    # encoder Linear 1
    w2, b2 = linear(k2, hid_dim, out_dim, hid_p, out_p)  # encoder Linear 2
    w3, b3 = linear(k3, out_dim, hid_dim, out_p, hid_p)  # decoder Linear 1
    w4, b4 = linear(k4, hid_dim, in_dim, hid_p, in_p)    # decoder Linear 2
    return dict(w1=w1, b1=b1, w2=w2, b2=b2, w3=w3, b3=b3, w4=w4, b4=b4,
                dims=(in_dim, hid_dim, out_dim))


def autoencoder_ref(x, p):
    """Pure-JAX reference matching the kernel's bf16-operand / f32-accumulate math."""
    in_dim, hid_dim, out_dim = p["dims"]
    w1 = p["w1"][:in_dim, :hid_dim].astype(jnp.float32); b1 = p["b1"][:, :hid_dim]
    w2 = p["w2"][:hid_dim, :out_dim].astype(jnp.float32); b2 = p["b2"][:, :out_dim]
    w3 = p["w3"][:out_dim, :hid_dim].astype(jnp.float32); b3 = p["b3"][:, :hid_dim]
    w4 = p["w4"][:hid_dim, :in_dim].astype(jnp.float32); b4 = p["b4"][:, :in_dim]

    bf = lambda a: a.astype(jnp.bfloat16).astype(jnp.float32)
    h1 = jax.nn.relu(bf(x) @ w1 + b1)
    lat = jax.nn.relu(bf(h1) @ w2 + b2)
    h2 = jax.nn.relu(bf(lat) @ w3 + b3)
    fea = jax.nn.relu(bf(h2) @ w4 + b4)
    return fea, lat


if __name__ == "__main__":
    B, in_dim, hid_dim, out_dim = 8, 32, 64, 16

    key = jax.random.PRNGKey(0)
    k_x, k_p = jax.random.split(key)
    x = jax.random.normal(k_x, (B, in_dim), jnp.float32)
    params = init_params(k_p, in_dim, hid_dim, out_dim)

    fea_new, latent = jax.block_until_ready(autoencoder_forward(x, params))

    # Correctness check against pure-JAX reference (bf16 matmul tolerance).
    fea_ref, lat_ref = autoencoder_ref(x, params)
    assert fea_new.shape == (B, in_dim) and latent.shape == (B, out_dim)
    assert jnp.allclose(fea_new, fea_ref, atol=2e-2, rtol=2e-2)
    assert jnp.allclose(latent, lat_ref, atol=2e-2, rtol=2e-2)

    print("KERNEL_OK")
</pallas_src>

<mosaic_0001>
module attributes {stable_mosaic.version = 11 : i64} {
  func.func @autoencoder_kernel(%arg0: i32, %arg1: memref<8x128xf32, #tpu.memory_space<vmem>>, %arg2: memref<128x128xbf16, #tpu.memory_space<vmem>>, %arg3: memref<1x128xf32, #tpu.memory_space<vmem>>, %arg4: memref<128x128xbf16, #tpu.memory_space<vmem>>, %arg5: memref<1x128xf32, #tpu.memory_space<vmem>>, %arg6: memref<128x128xbf16, #tpu.memory_space<vmem>>, %arg7: memref<1x128xf32, #tpu.memory_space<vmem>>, %arg8: memref<128x128xbf16, #tpu.memory_space<vmem>>, %arg9: memref<1x128xf32, #tpu.memory_space<vmem>>, %arg10: memref<8x128xf32, #tpu.memory_space<vmem>>, %arg11: memref<8x128xf32, #tpu.memory_space<vmem>>) attributes {dimension_semantics = [#tpu.dimension_semantics<parallel>], iteration_bounds = array<i64: 1>, scalar_prefetch = 0 : i64, scratch_operands = 0 : i64, tpu.core_type = #tpu.core_type<tc>, window_params = [{transform_indices = @transform_0, window_bounds = array<i64: 8, 128>}, {pipeline_mode = #tpu.pipeline_mode<synchronous>, transform_indices = @transform_1, window_bounds = array<i64: 128, 128>}, {pipeline_mode = #tpu.pipeline_mode<synchronous>, transform_indices = @transform_2, window_bounds = array<i64: 1, 128>}, {pipeline_mode = #tpu.pipeline_mode<synchronous>, transform_indices = @transform_3, window_bounds = array<i64: 128, 128>}, {pipeline_mode = #tpu.pipeline_mode<synchronous>, transform_indices = @transform_4, window_bounds = array<i64: 1, 128>}, {pipeline_mode = #tpu.pipeline_mode<synchronous>, transform_indices = @transform_5, window_bounds = array<i64: 128, 128>}, {pipeline_mode = #tpu.pipeline_mode<synchronous>, transform_indices = @transform_6, window_bounds = array<i64: 1, 128>}, {pipeline_mode = #tpu.pipeline_mode<synchronous>, transform_indices = @transform_7, window_bounds = array<i64: 128, 128>}, {pipeline_mode = #tpu.pipeline_mode<synchronous>, transform_indices = @transform_8, window_bounds = array<i64: 1, 128>}, {transform_indices = @transform_9, window_bounds = array<i64: 8, 128>}, {transform_indices = @transform_10, window_bounds = array<i64: 8, 128>}]} {
    %c0 = arith.constant 0 : index
    %c0_0 = arith.constant 0 : index
    %0 = vector.load %arg1[%c0, %c0_0] : memref<8x128xf32, #tpu.memory_space<vmem>>, vector<8x128xf32>
    %1 = arith.truncf %0 : vector<8x128xf32> to vector<8x128xbf16>
    %c0_1 = arith.constant 0 : index
    %c0_2 = arith.constant 0 : index
    %2 = vector.load %arg2[%c0_1, %c0_2] : memref<128x128xbf16, #tpu.memory_space<vmem>>, vector<128x128xbf16>
    %cst = arith.constant dense<0.000000e+00> : vector<8x128xf32>
    %3 = tpu.matmul %1, %2, %cst {dimension_numbers = #tpu.dot_dimension_numbers<[1], [0], [0], [1], [0, 0, 1, 1], [], []>} : vector<8x128xbf16>, vector<128x128xbf16>, vector<8x128xf32> -> vector<8x128xf32>
    %c0_3 = arith.constant 0 : index
    %c0_4 = arith.constant 0 : index
    %4 = vector.load %arg3[%c0_3, %c0_4] : memref<1x128xf32, #tpu.memory_space<vmem>>, vector<1x128xf32>
    %5 = vector.broadcast %4 : vector<1x128xf32> to vector<8x128xf32>
    %6 = arith.addf %3, %5 : vector<8x128xf32>
    %cst_5 = arith.constant 0.000000e+00 : f32
    %7 = vector.broadcast %cst_5 : f32 to vector<8x128xf32>
    %8 = arith.maximumf %6, %7 : vector<8x128xf32>
    %9 = arith.truncf %8 : vector<8x128xf32> to vector<8x128xbf16>
    %c0_6 = arith.constant 0 : index
    %c0_7 = arith.constant 0 : index
    %10 = vector.load %arg4[%c0_6, %c0_7] : memref<128x128xbf16, #tpu.memory_space<vmem>>, vector<128x128xbf16>
    %cst_8 = arith.constant dense<0.000000e+00> : vector<8x128xf32>
    %11 = tpu.matmul %9, %10, %cst_8 {dimension_numbers = #tpu.dot_dimension_numbers<[1], [0], [0], [1], [0, 0, 1, 1], [], []>} : vector<8x128xbf16>, vector<128x128xbf16>, vector<8x128xf32> -> vector<8x128xf32>
    %c0_9 = arith.constant 0 : index
    %c0_10 = arith.constant 0 : index
    %12 = vector.load %arg5[%c0_9, %c0_10] : memref<1x128xf32, #tpu.memory_space<vmem>>, vector<1x128xf32>
    %13 = vector.broadcast %12 : vector<1x128xf32> to vector<8x128xf32>
    %14 = arith.addf %11, %13 : vector<8x128xf32>
    %cst_11 = arith.constant 0.000000e+00 : f32
    %15 = vector.broadcast %cst_11 : f32 to vector<8x128xf32>
    %16 = arith.maximumf %14, %15 : vector<8x128xf32>
    %c0_12 = arith.constant 0 : index
    %c0_13 = arith.constant 0 : index
    %17 = vector.load %arg11[%c0_12, %c0_13] : memref<8x128xf32, #tpu.memory_space<vmem>>, vector<8x128xf32>
    tpu.vector_store %arg11[%c0_12, %c0_13], %16 {strides = array<i32>} : memref<8x128xf32, #tpu.memory_space<vmem>>, vector<8x128xf32>,
    %18 = arith.truncf %16 : vector<8x128xf32> to vector<8x128xbf16>
    %c0_14 = arith.constant 0 : index
    %c0_15 = arith.constant 0 : index
    %19 = vector.load %arg6[%c0_14, %c0_15] : memref<128x128xbf16, #tpu.memory_space<vmem>>, vector<128x128xbf16>
    %cst_16 = arith.constant dense<0.000000e+00> : vector<8x128xf32>
    %20 = tpu.matmul %18, %19, %cst_16 {dimension_numbers = #tpu.dot_dimension_numbers<[1], [0], [0], [1], [0, 0, 1, 1], [], []>} : vector<8x128xbf16>, vector<128x128xbf16>, vector<8x128xf32> -> vector<8x128xf32>
    %c0_17 = arith.constant 0 : index
    %c0_18 = arith.constant 0 : index
    %21 = vector.load %arg7[%c0_17, %c0_18] : memref<1x128xf32, #tpu.memory_space<vmem>>, vector<1x128xf32>
    %22 = vector.broadcast %21 : vector<1x128xf32> to vector<8x128xf32>
    %23 = arith.addf %20, %22 : vector<8x128xf32>
    %cst_19 = arith.constant 0.000000e+00 : f32
    %24 = vector.broadcast %cst_19 : f32 to vector<8x128xf32>
    %25 = arith.maximumf %23, %24 : vector<8x128xf32>
    %26 = arith.truncf %25 : vector<8x128xf32> to vector<8x128xbf16>
    %c0_20 = arith.constant 0 : index
    %c0_21 = arith.constant 0 : index
    %27 = vector.load %arg8[%c0_20, %c0_21] : memref<128x128xbf16, #tpu.memory_space<vmem>>, vector<128x128xbf16>
    %cst_22 = arith.constant dense<0.000000e+00> : vector<8x128xf32>
    %28 = tpu.matmul %26, %27, %cst_22 {dimension_numbers = #tpu.dot_dimension_numbers<[1], [0], [0], [1], [0, 0, 1, 1], [], []>} : vector<8x128xbf16>, vector<128x128xbf16>, vector<8x128xf32> -> vector<8x128xf32>
    %c0_23 = arith.constant 0 : index
    %c0_24 = arith.constant 0 : index
    %29 = vector.load %arg9[%c0_23, %c0_24] : memref<1x128xf32, #tpu.memory_space<vmem>>, vector<1x128xf32>
    %30 = vector.broadcast %29 : vector<1x128xf32> to vector<8x128xf32>
    %31 = arith.addf %28, %30 : vector<8x128xf32>
    %cst_25 = arith.constant 0.000000e+00 : f32
    %32 = vector.broadcast %cst_25 : f32 to vector<8x128xf32>
    %33 = arith.maximumf %31, %32 : vector<8x128xf32>
    %c0_26 = arith.constant 0 : index
    %c0_27 = arith.constant 0 : index
    %34 = vector.load %arg10[%c0_26, %c0_27] : memref<8x128xf32, #tpu.memory_space<vmem>>, vector<8x128xf32>
    tpu.vector_store %arg10[%c0_26, %c0_27], %33 {strides = array<i32>} : memref<8x128xf32, #tpu.memory_space<vmem>>, vector<8x128xf32>,
    return
  }
  func.func @transform_0(%arg0: i32) -> (i32, i32) {
    %c0_i32 = arith.constant 0 : i32
    %c0_i32_0 = arith.constant 0 : i32
    return %arg0, %c0_i32 : i32, i32
  }
  func.func @transform_1(%arg0: i32) -> (i32, i32) {
    %c0_i32 = arith.constant 0 : i32
    %c0_i32_0 = arith.constant 0 : i32
    %c0_i32_1 = arith.constant 0 : i32
    return %c0_i32, %c0_i32_0 : i32, i32
  }
  func.func @transform_2(%arg0: i32) -> (i32, i32) {
    %c0_i32 = arith.constant 0 : i32
    %c0_i32_0 = arith.constant 0 : i32
    %c0_i32_1 = arith.constant 0 : i32
    return %c0_i32, %c0_i32_0 : i32, i32
  }
  func.func @transform_3(%arg0: i32) -> (i32, i32) {
    %c0_i32 = arith.constant 0 : i32
    %c0_i32_0 = arith.constant 0 : i32
    %c0_i32_1 = arith.constant 0 : i32
    return %c0_i32, %c0_i32_0 : i32, i32
  }
  func.func @transform_4(%arg0: i32) -> (i32, i32) {
    %c0_i32 = arith.constant 0 : i32
    %c0_i32_0 = arith.constant 0 : i32
    %c0_i32_1 = arith.constant 0 : i32
    return %c0_i32, %c0_i32_0 : i32, i32
  }
  func.func @transform_5(%arg0: i32) -> (i32, i32) {
    %c0_i32 = arith.constant 0 : i32
    %c0_i32_0 = arith.constant 0 : i32
    %c0_i32_1 = arith.constant 0 : i32
    return %c0_i32, %c0_i32_0 : i32, i32
  }
  func.func @transform_6(%arg0: i32) -> (i32, i32) {
    %c0_i32 = arith.constant 0 : i32
    %c0_i32_0 = arith.constant 0 : i32
    %c0_i32_1 = arith.constant 0 : i32
    return %c0_i32, %c0_i32_0 : i32, i32
  }
  func.func @transform_7(%arg0: i32) -> (i32, i32) {
    %c0_i32 = arith.constant 0 : i32
    %c0_i32_0 = arith.constant 0 : i32
    %c0_i32_1 = arith.constant 0 : i32
    return %c0_i32, %c0_i32_0 : i32, i32
  }
  func.func @transform_8(%arg0: i32) -> (i32, i32) {
    %c0_i32 = arith.constant 0 : i32
    %c0_i32_0 = arith.constant 0 : i32
    %c0_i32_1 = arith.constant 0 : i32
    return %c0_i32, %c0_i32_0 : i32, i32
  }
  func.func @transform_9(%arg0: i32) -> (i32, i32) {
    %c0_i32 = arith.constant 0 : i32
    %c0_i32_0 = arith.constant 0 : i32
    return %arg0, %c0_i32 : i32, i32
  }
  func.func @transform_10(%arg0: i32) -> (i32, i32) {
    %c0_i32 = arith.constant 0 : i32
    %c0_i32_0 = arith.constant 0 : i32
    return %arg0, %c0_i32 : i32, i32
  }
}

</mosaic_0001>

<bundles_post_ra>
// kernel: tpu_custom_call.1
= control target key start
LH: loop header
LB: loop body
LE: loop exit
PB: predicated region body
PF: predicated region fallthrough
CT: control target
= control target key end

     0   :  { %16 = vsyncpa [#allocation3], 0  ;;  %s1162_s0 = inlined_call_operand.hbm [shape: f32[8,128], index: 0, kind: input, shape index: {}]   ;;  %s1163_s1 = inlined_call_operand.hbm [shape: bf16[128,128], index: 1, kind: input, shape index: {}]   ;;  %s1164_s2 = inlined_call_operand.vmem [shape: f32[1,128], index: 2, kind: input, shape index: {}]   ;;  %s1165_s3 = inlined_call_operand.hbm [shape: bf16[128,128], index: 3, kind: input, shape index: {}]   ;;  %s1166_s4 = inlined_call_operand.vmem [shape: f32[1,128], index: 4, kind: input, shape index: {}]   ;;  %s1167_s5 = inlined_call_operand.hbm [shape: bf16[128,128], index: 5, kind: input, shape index: {}]   ;;  %s1168_s6 = inlined_call_operand.vmem [shape: f32[1,128], index: 6, kind: input, shape index: {}]   ;;  %s1169_s7 = inlined_call_operand.hbm [shape: bf16[128,128], index: 7, kind: input, shape index: {}]   ;;  %s1170_s8 = inlined_call_operand.vmem [shape: f32[1,128], index: 8, kind: input, shape index: {}]   ;;  %s1171_s9 = inlined_call_operand.hbm [shape: f32[8,128], index: 9, kind: output, shape index: {0}]   ;;  %s1172_s10 = inlined_call_operand.hbm [shape: f32[8,128], index: 10, kind: output, shape index: {1}]  }
   0x1   :  { %17 = vsyncpa [#allocation6], 0 }
   0x2   :  { %18 = vsyncpa [#allocation9], 0 }
   0x3   :  { %19 = vsyncpa [#allocation4], 0 }
   0x4   :  { %20 = vsyncpa [#allocation13], 0  ;;  %s948_s13 = smov [#allocation5]   ;;  %s784_s17 = scalar_lea.hbm %s1163_s1, 1024 }
   0x5   :  { %s36_s14 = sshll.u32 %s948_s13, 4  ;;  %p785_p0 = scmp.ne.s32.totalorder %s1163_s1, %s784_s17  ;;  %s37_s14 = int_to_ptr.vmem [resolvable:$true] %s36_s14 }
   0x6   :  { %p788_p1 = scmp.lt.u32.totalorder %s784_s17, %s1163_s1 }
   0x8   :  { %p790_p2 = pnand %p788_p1, %p785_p0 }
   0xa   :  { %793 = shalt.err (!%p790_p2)
}
   0xb   :  { %s794_s22 = scalar_lea.vmem %s37_s14, 1024  ;;  %p799_p4 = scmp.lt.s32.totalorder %s37_s14, %s37_s14 }
   0xc   :  { %p795_p3 = scmp.ne.s32.totalorder %s37_s14, %s794_s22  ;;  %p800_p5 = scmp.lt.s32.totalorder %s794_s22, %s794_s22 }
   0xe   :  { %p801_p6 = por %p800_p5, %p799_p4 }
  0x10   :  { %p802_p7 = pnand %p801_p6, %p795_p3 }
  0x12   :  { %805 = shalt.err (!%p802_p7)
}
  0x13   :  { %s949_s23 = smov 64   ;;  %s950_s24 = smov 4  }
  0x14   :  { %42 = dma.hbm_to_vmem [thread:$0]  %s1163_s1, 1024, %s37_s14, [#allocation6], %s949_s23, %s949_s23, %s950_s24  }
  0x15   :  { %s951_s27 = smov [#allocation8]   ;;  %s952_s29 = smov [#allocation2]  }
  0x16   :  { %s64_s28 = sshll.u32 %s951_s27, 4  ;;  %s27_s30 = sshll.u32 %s952_s29, 4  ;;  %s65_s28 = int_to_ptr.vmem [resolvable:$true] %s64_s28  ;;  %s28_s30 = int_to_ptr.vmem [resolvable:$true] %s27_s30 }
  0x17   :  { %s806_s13 = scalar_lea.hbm %s1167_s5, 1024 }
  0x18   :  { %p807_p8 = scmp.ne.s32.totalorder %s1167_s5, %s806_s13  ;;  %p810_p9 = scmp.lt.u32.totalorder %s806_s13, %s1167_s5 }
  0x1a   :  { %p812_p10 = pnand %p810_p9, %p807_p8 }
  0x1c   :  { %815 = shalt.err (!%p812_p10)
}
  0x1d   :  { %s816_s1 = scalar_lea.vmem %s65_s28, 1024  ;;  %p821_p12 = scmp.lt.s32.totalorder %s65_s28, %s65_s28 }
  0x1e   :  { %p817_p11 = scmp.ne.s32.totalorder %s65_s28, %s816_s1  ;;  %p822_p13 = scmp.lt.s32.totalorder %s816_s1, %s816_s1 }
  0x20   :  { %p823_p0 = por %p822_p13, %p821_p12 }
  0x22   :  { %p824_p1 = pnand %p823_p0, %p817_p11 }
  0x24   :  { %827 = shalt.err (!%p824_p1)
}
  0x25   :  { %70 = dma.hbm_to_vmem [thread:$0]  %s1167_s5, 1024, %s65_s28, [#allocation9], %s949_s23, %s949_s23, %s950_s24  }
  0x26   :  { %s828_s22 = scalar_lea.hbm %s1162_s0, 128 }
  0x27   :  { %p829_p2 = scmp.ne.s32.totalorder %s1162_s0, %s828_s22  ;;  %p832_p3 = scmp.lt.u32.totalorder %s828_s22, %s1162_s0 }
  0x29   :  { %p834_p4 = pnand %p832_p3, %p829_p2 }
  0x2b   :  { %837 = shalt.err (!%p834_p4)
}
  0x2c   :  { %s838_s11 = scalar_lea.vmem %s28_s30, 128  ;;  %p843_p6 = scmp.lt.s32.totalorder %s28_s30, %s28_s30 }
  0x2d   :  { %p839_p5 = scmp.ne.s32.totalorder %s28_s30, %s838_s11  ;;  %p844_p7 = scmp.lt.s32.totalorder %s838_s11, %s838_s11 }
  0x2f   :  { %p845_p8 = por %p844_p7, %p843_p6 }
  0x31   :  { %p846_p9 = pnand %p845_p8, %p839_p5 }
  0x33   :  { %849 = shalt.err (!%p846_p9)
}
  0x34   :  { %30 = dma.hbm_to_vmem [thread:$0]  %s1162_s0, 128, %s28_s30, [#allocation3]  }
  0x35   :  { %s953_s12 = smov [#allocation7]   ;;  %s954_s15 = smov [#allocation10]  }
  0x36   :  { %s50_s13 = sshll.u32 %s953_s12, 4  ;;  %s78_s16 = sshll.u32 %s954_s15, 4  ;;  %s51_s13 = int_to_ptr.vmem [resolvable:$true] %s50_s13  ;;  %s79_s16 = int_to_ptr.vmem [resolvable:$true] %s78_s16 }
  0x37   :  { %s850_s1 = scalar_lea.hbm %s1165_s3, 1024 }
  0x38   :  { %p851_p10 = scmp.ne.s32.totalorder %s1165_s3, %s850_s1  ;;  %p854_p11 = scmp.lt.u32.totalorder %s850_s1, %s1165_s3 }
  0x3a   :  { %p856_p12 = pnand %p854_p11, %p851_p10 }
  0x3c   :  { %859 = shalt.err (!%p856_p12)
}
  0x3d   :  { %s860_s0 = scalar_lea.vmem %s51_s13, 1024  ;;  %p865_p0 = scmp.lt.s32.totalorder %s51_s13, %s51_s13 }
  0x3e   :  { %p861_p13 = scmp.ne.s32.totalorder %s51_s13, %s860_s0  ;;  %p866_p1 = scmp.lt.s32.totalorder %s860_s0, %s860_s0 }
  0x40   :  { %p867_p2 = por %p866_p1, %p865_p0 }
  0x42   :  { %p868_p3 = pnand %p867_p2, %p861_p13 }
  0x44   :  { %871 = shalt.err (!%p868_p3)
}
  0x45   :  { %56 = dma.hbm_to_vmem [thread:$0]  %s1165_s3, 1024, %s51_s13, [#allocation6], %s949_s23, %s949_s23, %s950_s24  }
  0x46   :  { %s872_s27 = scalar_lea.hbm %s1169_s7, 1024 }
  0x47   :  { %p873_p4 = scmp.ne.s32.totalorder %s1169_s7, %s872_s27  ;;  %p876_p5 = scmp.lt.u32.totalorder %s872_s27, %s1169_s7 }
  0x49   :  { %p878_p6 = pnand %p876_p5, %p873_p4 }
  0x4b   :  { %881 = shalt.err (!%p878_p6)
}
  0x4c   :  { %s882_s12 = scalar_lea.vmem %s79_s16, 1024  ;;  %p887_p8 = scmp.lt.s32.totalorder %s79_s16, %s79_s16 }
  0x4d   :  { %p883_p7 = scmp.ne.s32.totalorder %s79_s16, %s882_s12  ;;  %p888_p9 = scmp.lt.s32.totalorder %s882_s12, %s882_s12 }
  0x4f   :  { %p889_p10 = por %p888_p9, %p887_p8 }
  0x51   :  { %p890_p11 = pnand %p889_p10, %p883_p7 }
  0x53   :  { %893 = shalt.err (!%p890_p11)
}
  0x54   :  { %84 = dma.hbm_to_vmem [thread:$0]  %s1169_s7, 1024, %s79_s16, [#allocation9], %s949_s23, %s949_s23, %s950_s24  }
  0x55   :  { %938 = dma.done.wait [#allocation3], 128  }
  0x56   :  { %939 = vsyncadd [#allocation3], 4294967168 }
  0x57   :  { %940 = dma.done.wait [#allocation6], 2048  }
  0x58   :  { %941 = vsyncadd [#allocation6], 4294965248 }
  0x59   :  { %942 = dma.done.wait [#allocation9], 2048  }
  0x5a   :  { %943 = vsyncadd [#allocation9], 4294965248  ;;  %v955_v0 = vmov 0.0   ;;  %vm956_vm0 = vmmov 0   ;;  %v752_v1 = vld [vmem:[#allocation5] sm:$0xff]   ;;  %v753_v2 = vld [vmem:[#allocation5 + $0x8] sm:$0xff]  }
  0x5b   :  { %661 = vmatprep.subr.bf16.mxu0 %v955_v0  ;;  %677 = vmatprep.mubr.msk.bf16.mxu0 %vm956_vm0, %v955_v0  ;;  %v754_v3 = vld [vmem:[#allocation5 + $0x10] sm:$0xff]   ;;  %v760_v4 = vld [vmem:[#allocation7] sm:$0xff]   ;;  %v755_v5 = vld [vmem:[#allocation5 + $0x18] sm:$0xff]  }
  0x5c   :  { %681 = vmatprep.subr.bf16.mxu1 %v955_v0  ;;  %697 = vmatprep.mubr.msk.bf16.mxu1 %vm956_vm0, %v955_v0  ;;  %v761_v6 = vld [vmem:[#allocation7 + $0x8] sm:$0xff]   ;;  %v756_v7 = vld [vmem:[#allocation5 + $0x20] sm:$0xff]   ;;  %v762_v8 = vld [vmem:[#allocation7 + $0x10] sm:$0xff]  }
  0x5d   :  { %662 = vmatpush3.bf16.msra.mxu0 %v752_v1  ;;  %682 = vmatpush3.bf16.msra.mxu1 %v760_v4  ;;  %v757_v9 = vld [vmem:[#allocation5 + $0x28] sm:$0xff]   ;;  %v763_v10 = vld [vmem:[#allocation7 + $0x18] sm:$0xff]   ;;  %v758_v11 = vld [vmem:[#allocation5 + $0x30] sm:$0xff]  }
  0x5e   :  { %663 = vmatprep.subr.bf16.mxu0 %v955_v0  ;;  %683 = vmatprep.subr.bf16.mxu1 %v955_v0  ;;  %v764_v12 = vld [vmem:[#allocation7 + $0x20] sm:$0xff]   ;;  %v759_v13 = vld [vmem:[#allocation5 + $0x38] sm:$0xff]   ;;  %v765_v15 = vld [vmem:[#allocation7 + $0x28] sm:$0xff]  }
  0x5f   :  { %v103_v14 = vld [vmem:[#allocation2] sm:$0xff]  ;;  %v766_v17 = vld [vmem:[#allocation7 + $0x30] sm:$0xff]   ;;  %v768_v19 = vld [vmem:[#allocation8] sm:$0xff]  }
  0x60   :  { %v104_v16 = vpack.c.bf16 %v103_v14, %v103_v14  ;;  %v767_v18 = vld [vmem:[#allocation7 + $0x38] sm:$0xff]   ;;  %v769_v20 = vld [vmem:[#allocation8 + $0x8] sm:$0xff]   ;;  %v770_v21 = vld [vmem:[#allocation8 + $0x10] sm:$0xff]  }
  0x61   :  { %664 = vmatpush3.bf16.msra.mxu0 %v753_v2  ;;  %684 = vmatpush3.bf16.msra.mxu1 %v761_v6  ;;  %v771_v22 = vld [vmem:[#allocation8 + $0x18] sm:$0xff]   ;;  %v772_v23 = vld [vmem:[#allocation8 + $0x20] sm:$0xff]   ;;  %v773_v24 = vld [vmem:[#allocation8 + $0x28] sm:$0xff]  }
  0x62   :  { %665 = vmatprep.subr.bf16.mxu0 %v955_v0  ;;  %685 = vmatprep.subr.bf16.mxu1 %v955_v0  ;;  %v589_v25 = vld [vmem:[%s1164_s2] ss:$0 sm:$0xff]  ;;  %v774_v33 = vld [vmem:[#allocation8 + $0x30] sm:$0xff]   ;;  %v776_v35 = vld [vmem:[#allocation10] sm:$0xff]  }
  0x63   :  { %v775_v34 = vld [vmem:[#allocation8 + $0x38] sm:$0xff]   ;;  %v777_v36 = vld [vmem:[#allocation10 + $0x8] sm:$0xff]   ;;  %v778_v37 = vld [vmem:[#allocation10 + $0x10] sm:$0xff]  }
  0x64   :  { %v779_v38 = vld [vmem:[#allocation10 + $0x18] sm:$0xff]   ;;  %v780_v39 = vld [vmem:[#allocation10 + $0x20] sm:$0xff]   ;;  %v781_v40 = vld [vmem:[#allocation10 + $0x28] sm:$0xff]  }
  0x65   :  { %666 = vmatpush3.bf16.msra.mxu0 %v754_v3  ;;  %686 = vmatpush3.bf16.msra.mxu1 %v762_v8  ;;  %v598_v41 = vld [vmem:[%s1166_s4] ss:$0 sm:$0xff]  ;;  %v782_v49 = vld [vmem:[#allocation10 + $0x30] sm:$0xff]   ;;  %s957_s4 = smov [#allocation12]  }
  0x66   :  { %667 = vmatprep.subr.bf16.mxu0 %v955_v0  ;;  %687 = vmatprep.subr.bf16.mxu1 %v955_v0  ;;  %v783_v50 = vld [vmem:[#allocation10 + $0x38] sm:$0xff]   ;;  %s574_s17 = sshll.u32 %s957_s4, 4  ;;  %s575_s17 = int_to_ptr.vmem [resolvable:$true] %s574_s17 }
  0x67   :  { %v607_v51 = vld [vmem:[%s1168_s6] ss:$0 sm:$0xff]  ;;  %s894_s18 = scalar_lea.vmem %s575_s17, 128  ;;  %p899_p13 = scmp.lt.s32.totalorder %s575_s17, %s575_s17 }
  0x68   :  { %p895_p12 = scmp.ne.s32.totalorder %s575_s17, %s894_s18  ;;  %p900_p0 = scmp.lt.s32.totalorder %s894_s18, %s894_s18 }
  0x69   :  { %668 = vmatpush3.bf16.msra.mxu0 %v755_v5  ;;  %688 = vmatpush3.bf16.msra.mxu1 %v763_v10 }
  0x6a   :  { %669 = vmatprep.subr.bf16.mxu0 %v955_v0  ;;  %689 = vmatprep.subr.bf16.mxu1 %v955_v0  ;;  %p901_p1 = por %p900_p0, %p899_p13 }
  0x6c   :  { %p902_p2 = pnand %p901_p1, %p895_p12 }
  0x6d   :  { %670 = vmatpush3.bf16.msra.mxu0 %v756_v7  ;;  %690 = vmatpush3.bf16.msra.mxu1 %v764_v12 }
  0x6e   :  { %671 = vmatprep.subr.bf16.mxu0 %v955_v0  ;;  %691 = vmatprep.subr.bf16.mxu1 %v955_v0 }
  0x71   :  { %672 = vmatpush3.bf16.msra.mxu0 %v757_v9  ;;  %692 = vmatpush3.bf16.msra.mxu1 %v765_v15 }
  0x72   :  { %673 = vmatprep.subr.bf16.mxu0 %v955_v0  ;;  %693 = vmatprep.subr.bf16.mxu1 %v955_v0 }
  0x75   :  { %674 = vmatpush3.bf16.msra.mxu0 %v758_v11  ;;  %694 = vmatpush3.bf16.msra.mxu1 %v766_v17 }
  0x76   :  { %675 = vmatprep.subr.bf16.mxu0 %v955_v0  ;;  %695 = vmatprep.subr.bf16.mxu1 %v955_v0 }
  0x79   :  { %676 = vmatpush3.bf16.msra.mxu0 %v759_v13  ;;  %696 = vmatpush3.bf16.msra.mxu1 %v767_v18 }
  0x7a   :  { %701 = vmatprep.subr.bf16.mxu0 %v955_v0  ;;  %721 = vmatprep.subr.bf16.mxu1 %v955_v0 }
  0x7c   :  { %678 = vmatmul.mubr.bf16.vlgmr.msra.gmra.mrb[0].mxu0 %v104_v16 }
  0x7d   :  { %717 = vmatprep.mubr.msk.bf16.mxu0 %vm956_vm0, %v955_v0  ;;  %702 = vmatpush3.bf16.msra.mxu0 %v768_v19 }
  0x7e   :  { %703 = vmatprep.subr.bf16.mxu0 %v955_v0 }
  0x81   :  { %704 = vmatpush3.bf16.msra.mxu0 %v769_v20 }
  0x82   :  { %705 = vmatprep.subr.bf16.mxu0 %v955_v0 }
  0x85   :  { %706 = vmatpush3.bf16.msra.mxu0 %v770_v21 }
  0x86   :  { %707 = vmatprep.subr.bf16.mxu0 %v955_v0 }
  0x89   :  { %708 = vmatpush3.bf16.msra.mxu0 %v771_v22 }
  0x8a   :  { %709 = vmatprep.subr.bf16.mxu0 %v955_v0 }
  0x8d   :  { %710 = vmatpush3.bf16.msra.mxu0 %v772_v23 }
  0x8e   :  { %711 = vmatprep.subr.bf16.mxu0 %v955_v0 }
  0x91   :  { %712 = vmatpush3.bf16.msra.mxu0 %v773_v24 }
  0x92   :  { %713 = vmatprep.subr.bf16.mxu0 %v955_v0 }
  0x95   :  { %714 = vmatpush3.bf16.msra.mxu0 %v774_v33 }
  0x96   :  { %715 = vmatprep.subr.bf16.mxu0 %v955_v0 }
  0x99   :  { %716 = vmatpush3.bf16.msra.mxu0 %v775_v34 }
 0x14f   :  { %v210_v26 = vpop.f32.mrb[0].mxu0 }
 0x150   :  { %v211_v27 = vadd.f32 %v589_v25, %v210_v26  ;;  %v679_v28 = vpop.f32.mrb[1].mxu0 }
 0x151   :  { %v213_v29 = vpop.f32.mrb[2].mxu0 }
 0x152   :  { %v216_v30 = vmax.f32 %v211_v27, 0.0  ;;  %v680_v31 = vpop.f32.mrb[3].mxu0 }
 0x154   :  { %v217_v32 = vpack.c.bf16 %v216_v30, %v216_v30 }
 0x156   :  { %698 = vmatmul.mubr.bf16.vlgmr.msra.gmra.mrb[0].mxu1 %v217_v32 }
 0x157   :  { %737 = vmatprep.mubr.msk.bf16.mxu1 %vm956_vm0, %v955_v0  ;;  %722 = vmatpush3.bf16.msra.mxu1 %v776_v35 }
 0x158   :  { %723 = vmatprep.subr.bf16.mxu1 %v955_v0 }
 0x15b   :  { %724 = vmatpush3.bf16.msra.mxu1 %v777_v36 }
 0x15c   :  { %725 = vmatprep.subr.bf16.mxu1 %v955_v0 }
 0x15f   :  { %726 = vmatpush3.bf16.msra.mxu1 %v778_v37 }
 0x160   :  { %727 = vmatprep.subr.bf16.mxu1 %v955_v0 }
 0x163   :  { %728 = vmatpush3.bf16.msra.mxu1 %v779_v38 }
 0x164   :  { %729 = vmatprep.subr.bf16.mxu1 %v955_v0 }
 0x167   :  { %730 = vmatpush3.bf16.msra.mxu1 %v780_v39 }
 0x168   :  { %731 = vmatprep.subr.bf16.mxu1 %v955_v0 }
 0x16b   :  { %732 = vmatpush3.bf16.msra.mxu1 %v781_v40 }
 0x16c   :  { %733 = vmatprep.subr.bf16.mxu1 %v955_v0 }
 0x16f   :  { %734 = vmatpush3.bf16.msra.mxu1 %v782_v49 }
 0x170   :  { %735 = vmatprep.subr.bf16.mxu1 %v955_v0 }
 0x173   :  { %736 = vmatpush3.bf16.msra.mxu1 %v783_v50 }
 0x229   :  { %v323_v42 = vpop.f32.mrb[0].mxu1 }
 0x22a   :  { %v324_v43 = vadd.f32 %v598_v41, %v323_v42  ;;  %v699_v44 = vpop.f32.mrb[1].mxu1 }
 0x22b   :  { %v326_v45 = vpop.f32.mrb[2].mxu1 }
 0x22c   :  { %v329_v46 = vmax.f32 %v324_v43, 0.0  ;;  %v700_v47 = vpop.f32.mrb[3].mxu1 }
 0x22e   :  { %v331_v48 = vpack.c.bf16 %v329_v46, %v329_v46  ;;  %330 = vst [vmem:[#allocation12] sm:$0xff] %v329_v46 }
 0x230   :  { %718 = vmatmul.mubr.bf16.vlgmr.msra.gmra.mrb[4].mxu0 %v331_v48 }
 0x303   :  { %v437_v52 = vpop.f32.mrb[4].mxu0 }
 0x304   :  { %v438_v53 = vadd.f32 %v607_v51, %v437_v52  ;;  %v719_v54 = vpop.f32.mrb[5].mxu0 }
 0x305   :  { %v440_v55 = vpop.f32.mrb[6].mxu0 }
 0x306   :  { %v443_v56 = vmax.f32 %v438_v53, 0.0  ;;  %v720_v57 = vpop.f32.mrb[7].mxu0 }
 0x308   :  { %v444_v58 = vpack.c.bf16 %v443_v56, %v443_v56 }
 0x30a   :  { %738 = vmatmul.mubr.bf16.vlgmr.msra.gmra.mrb[4].mxu1 %v444_v58 }
 0x30b   :  { %905 = shalt.err (!%p902_p2)
}
 0x30c   :  { %s906_s14 = scalar_lea.hbm %s1172_s10, 128 }
 0x30d   :  { %p907_p3 = scmp.ne.s32.totalorder %s1172_s10, %s906_s14  ;;  %p910_p4 = scmp.lt.u32.totalorder %s906_s14, %s1172_s10 }
 0x30f   :  { %p912_p5 = pnand %p910_p4, %p907_p3 }
 0x311   :  { %915 = shalt.err (!%p912_p5)
}
 0x312   :  { %577 = dma.vmem_to_hbm [thread:$0]  %s575_s17, 128, %s1172_s10, [#allocation13]   ;;  %v616_v59 = vld [vmem:[%s1170_s8] ss:$0 sm:$0xff] }
 0x313   :  { %s958_s27 = smov [#allocation11]  }
 0x314   :  { %s564_s29 = sshll.u32 %s958_s27, 4  ;;  %s565_s29 = int_to_ptr.vmem [resolvable:$true] %s564_s29 }
 0x315   :  { %s916_s11 = scalar_lea.vmem %s565_s29, 128  ;;  %p921_p7 = scmp.lt.s32.totalorder %s565_s29, %s565_s29 }
 0x316   :  { %p917_p6 = scmp.ne.s32.totalorder %s565_s29, %s916_s11  ;;  %p922_p8 = scmp.lt.s32.totalorder %s916_s11, %s916_s11 }
 0x318   :  { %p923_p9 = por %p922_p8, %p921_p7 }
 0x31a   :  { %p924_p10 = pnand %p923_p9, %p917_p6 }
 0x3dd   :  { %v550_v60 = vpop.f32.mrb[4].mxu1 }
 0x3de   :  { %v551_v61 = vadd.f32 %v616_v59, %v550_v60  ;;  %v739_v62 = vpop.f32.mrb[5].mxu1 }
 0x3df   :  { %v553_v63 = vpop.f32.mrb[6].mxu1 }
 0x3e0   :  { %v556_v0 = vmax.f32 %v551_v61, 0.0  ;;  %v740_v1 = vpop.f32.mrb[7].mxu1 }
 0x3e2   :  { %557 = vst [vmem:[#allocation11] sm:$0xff] %v556_v0 }
 0x3e3   :  { %927 = shalt.err (!%p924_p10)
}
 0x3e4   :  { %s928_s8 = scalar_lea.hbm %s1171_s9, 128 }
 0x3e5   :  { %p929_p11 = scmp.ne.s32.totalorder %s1171_s9, %s928_s8  ;;  %p932_p12 = scmp.lt.u32.totalorder %s928_s8, %s1171_s9 }
 0x3e7   :  { %p934_p13 = pnand %p932_p12, %p929_p11 }
 0x3e9   :  { %937 = shalt.err (!%p934_p13)
}
 0x3ea   :  { %567 = dma.vmem_to_hbm [thread:$0]  %s565_s29, 128, %s1171_s9, [#allocation4]  }
 0x3eb   :  { %944 = dma.done.wait [#allocation4], 128  }
 0x3ec   :  { %945 = vsyncadd [#allocation4], 4294967168 }
 0x3ed   :  { %946 = dma.done.wait [#allocation13], 128  }
 0x3ee   :  { %947 = vsyncadd [#allocation13], 4294967168 }
 0x3ef   :  { %584 = vsyncpa [#allocation3], 1 }
 0x3f0   :  { %585 = vsyncpa [#allocation6], 1 }
 0x3f1   :  { %586 = vsyncpa [#allocation9], 1 }
 0x3f2   :  { %587 = vsyncpa [#allocation4], 1 }
 0x3f3   :  { %588 = vsyncpa [#allocation13], 1 }

</bundles_post_ra>
